<compile_context>
chip_gen: v7x
topology: tpu7x:2x2x1
jax: 0.10.0
libtpu: 0.0.40
codegen_flags: <defaults>
</compile_context>

<pallas_src>
import functools

import jax
import jax.numpy as jnp
from jax.experimental import pallas as pl
from jax.experimental.pallas import tpu as pltpu

EPS = 1e-5    # nn.InstanceNorm3d default (affine=False, track_running_stats=False)
LANE = 128


def _round_up(x, m):
    return (x + m - 1) // m * m


def _conv_in_kernel(x_ref, w_ref, b_ref, o_ref, sum_sc, sq_sc, *, inv_s, n_pad):
    # grid = (N, pass, S_tiles); pass 0 = stats, pass 1 = normalize + write.
    p = pl.program_id(1)
    t = pl.program_id(2)
    nt = pl.num_programs(2)

    @pl.when((p == 0) & (t == 0))
    def _init():
        sum_sc[...] = jnp.zeros_like(sum_sc)
        sq_sc[...] = jnp.zeros_like(sq_sc)

    # 1x1x1 conv == channel matmul on the MXU: (C_out, C_in) @ (C_in, tile_s).
    h = jnp.dot(w_ref[...], x_ref[...],
                preferred_element_type=jnp.float32,
                precision=jax.lax.Precision.HIGHEST) + b_ref[...]

    @pl.when(p == 0)
    def _accumulate():
        sum_sc[...] += jnp.sum(h, axis=-1, keepdims=True)
        sq_sc[...] += jnp.sum(h * h, axis=-1, keepdims=True)

    @pl.when((p == 0) & (t == nt - 1))
    def _finalize():
        # Padded columns (x == 0) contributed exactly the bias; remove them.
        bb = b_ref[...]
        s1 = sum_sc[...] - n_pad * bb
        s2 = sq_sc[...] - n_pad * (bb * bb)
        mean = s1 * inv_s
        var = jnp.maximum(s2 * inv_s - mean * mean, 0.0)   # biased variance
        sum_sc[...] = mean
        sq_sc[...] = jax.lax.rsqrt(var + EPS)

    @pl.when(p == 1)
    def _normalize_write():
        o_ref[...] = ((h - sum_sc[...]) * sq_sc[...]).astype(o_ref.dtype)


def conv_in3d_forward(x, w, b, *, tile_s=None, vmem_budget_bytes=8 << 20):
    """x: (N, C_in, D, H, W) f32; w: (C_out, C_in); b: (C_out,) -> (N, C_out, D, H, W)."""
    N, C_in, D, H, W = x.shape
    C_out = w.shape[0]
    S = D * H * W

    if tile_s is None:
        # Double-buffered f32 input (C_in, tile_s) + output (C_out, tile_s)
        # tiles must fit the VMEM budget; keep the tile lane-dense.
        bytes_per_col = 4 * 2 * (C_in + C_out)
        tile_s = (vmem_budget_bytes // bytes_per_col) // LANE * LANE
        tile_s = min(max(tile_s, LANE), 4096, _round_up(S, LANE))
    tile_s = max(LANE, _round_up(tile_s, LANE))
    S_pad = _round_up(S, tile_s)
    T = S_pad // tile_s
    n_pad = S_pad - S

    x_flat = x.reshape(N, C_in, S).astype(jnp.float32)
    if n_pad:
        x_flat = jnp.pad(x_flat, ((0, 0), (0, 0), (0, n_pad)))
    w = w.astype(jnp.float32)
    b_col = b.astype(jnp.float32).reshape(C_out, 1)

    kernel = functools.partial(_conv_in_kernel,
                               inv_s=1.0 / float(S),
                               n_pad=float(n_pad))

    out = pl.pallas_call(
        kernel,
        out_shape=jax.ShapeDtypeStruct((N, C_out, S_pad), jnp.float32),
        grid_spec=pltpu.PrefetchScalarGridSpec(
            num_scalar_prefetch=0,
            grid=(N, 2, T),
            in_specs=[
                # batch dim squeezed -> kernel sees a (C_in, tile_s) slab.
                pl.BlockSpec((None, C_in, tile_s), lambda n, p, t: (n, 0, t)),
                pl.BlockSpec((C_out, C_in), lambda n, p, t: (0, 0)),   # weights
                pl.BlockSpec((C_out, 1), lambda n, p, t: (0, 0)),      # bias
            ],
            # Pass 0 keeps the output index at tile 0 (never written there);
            # pass 1 walks the tiles and writes them back.
            out_specs=pl.BlockSpec((None, C_out, tile_s),
                                   lambda n, p, t: (n, 0, t * p)),
            scratch_shapes=[
                pltpu.VMEM((C_out, 1), jnp.float32),   # sum   -> mean
                pltpu.VMEM((C_out, 1), jnp.float32),   # sumsq -> rstd
            ],
        ),
        compiler_params=pltpu.CompilerParams(
            dimension_semantics=("parallel", "arbitrary", "arbitrary")),
    )(x_flat, w, b_col)

    out = out[:, :, :S]
    return out.reshape(N, C_out, D, H, W)


def conv_in3d_reference(x, w, b):
    """Pure-JAX reference: Conv3d(k=1) + InstanceNorm3d (biased var, eps=1e-5)."""
    N, C_in, D, H, W = x.shape
    C_out = w.shape[0]
    xf = x.reshape(N, C_in, -1)
    h = jnp.einsum("oc,ncs->nos", xf=None if False else w, optimize=True,
                   precision=jax.lax.Precision.HIGHEST,
                   *(None,)) if False else (
        jnp.einsum("oc,ncs->nos", w, xf,
                   precision=jax.lax.Precision.HIGHEST) + b[None, :, None])
    m = h.mean(axis=-1, keepdims=True)
    v = ((h - m) ** 2).mean(axis=-1, keepdims=True)
    out = (h - m) / jnp.sqrt(v + EPS)
    return out.reshape(N, C_out, D, H, W)


if __name__ == "__main__":
    key = jax.random.PRNGKey(0)
    kx, kw, kb = jax.random.split(key, 3)

    N, C_in, C_out = 2, 4, 8

    # Conv3d(k=1) default init range.
    scale = 1.0 / jnp.sqrt(jnp.float32(C_in))
    w = jax.random.uniform(kw, (C_out, C_in), jnp.float32, -scale, scale)
    b = jax.random.uniform(kb, (C_out,), jnp.float32, -scale, scale)

    # Case 1: lane-dense S (no padding), single spatial tile.
    D1, H1, W1 = 4, 8, 8          # S = 256
    x1 = jax.random.normal(kx, (N, C_in, D1, H1, W1), jnp.float32)
    out1 = jax.block_until_ready(conv_in3d_forward(x1, w, b))
    ref1 = conv_in3d_reference(x1, w, b)
    assert out1.shape == (N, C_out, D1, H1, W1)
    err1 = float(jnp.max(jnp.abs(out1 - ref1)))
    assert jnp.allclose(out1, ref1, atol=1e-3, rtol=1e-3), err1

    # Case 2: ragged S (exercises lane-padding correction) + multi-tile grid.
    D2, H2, W2 = 3, 7, 9          # S = 189 -> padded to 256, tile_s=128, T=2
    x2 = jax.random.normal(jax.random.PRNGKey(1), (N, C_in, D2, H2, W2),
                           jnp.float32)
    out2 = jax.block_until_ready(conv_in3d_forward(x2, w, b, tile_s=128))
    ref2 = conv_in3d_reference(x2, w, b)
    assert out2.shape == (N, C_out, D2, H2, W2)
    err2 = float(jnp.max(jnp.abs(out2 - ref2)))
    assert jnp.allclose(out2, ref2, atol=1e-3, rtol=1e-3), err2

    print("KERNEL_OK")
</pallas_src>

<mosaic_0001>
module attributes {stable_mosaic.version = 11 : i64} {
  func.func @_conv_in_kernel(%arg0: i32, %arg1: i32, %arg2: i32, %arg3: memref<1x4x256xf32, #tpu.memory_space<vmem>>, %arg4: memref<8x4xf32, #tpu.memory_space<vmem>>, %arg5: memref<8x1xf32, #tpu.memory_space<vmem>>, %arg6: memref<1x8x256xf32, #tpu.memory_space<vmem>>, %arg7: memref<8x1xf32, #tpu.memory_space<vmem>>, %arg8: memref<8x1xf32, #tpu.memory_space<vmem>>) attributes {dimension_semantics = [#tpu.dimension_semantics<parallel>, #tpu.dimension_semantics<arbitrary>, #tpu.dimension_semantics<arbitrary>], iteration_bounds = array<i64: 2, 2, 1>, scalar_prefetch = 0 : i64, scratch_operands = 2 : i64, tpu.core_type = #tpu.core_type<tc>, window_params = [{transform_indices = @transform_0, window_bounds = array<i64: 1, 4, 256>}, {pipeline_mode = #tpu.pipeline_mode<synchronous>, transform_indices = @transform_1, window_bounds = array<i64: 8, 4>}, {pipeline_mode = #tpu.pipeline_mode<synchronous>, transform_indices = @transform_2, window_bounds = array<i64: 8, 1>}, {transform_indices = @transform_3, window_bounds = array<i64: 1, 8, 256>}]} {
    %c0_i32 = arith.constant 0 : i32
    %0 = arith.cmpi eq, %arg1, %c0_i32 : i32
    %c0_i32_0 = arith.constant 0 : i32
    %1 = arith.cmpi eq, %arg2, %c0_i32_0 : i32
    %2 = arith.andi %0, %1 : i1
    %3 = arith.extui %2 : i1 to i32
    %c0_i32_1 = arith.constant 0 : i32
    %4 = arith.cmpi ne, %3, %c0_i32_1 : i32
    scf.if %4 {
      %cst_14 = arith.constant 0.000000e+00 : f32
      %23 = vector.broadcast %cst_14 : f32 to vector<8x1xf32>
      %c0_15 = arith.constant 0 : index
      %c0_16 = arith.constant 0 : index
      %24 = vector.load %arg7[%c0_15, %c0_16] : memref<8x1xf32, #tpu.memory_space<vmem>>, vector<8x1xf32>
      tpu.vector_store %arg7[%c0_15, %c0_16], %23 {strides = array<i32>} : memref<8x1xf32, #tpu.memory_space<vmem>>, vector<8x1xf32>,
      %cst_17 = arith.constant 0.000000e+00 : f32
      %25 = vector.broadcast %cst_17 : f32 to vector<8x1xf32>
      %c0_18 = arith.constant 0 : index
      %c0_19 = arith.constant 0 : index
      %26 = vector.load %arg8[%c0_18, %c0_19] : memref<8x1xf32, #tpu.memory_space<vmem>>, vector<8x1xf32>
      tpu.vector_store %arg8[%c0_18, %c0_19], %25 {strides = array<i32>} : memref<8x1xf32, #tpu.memory_space<vmem>>, vector<8x1xf32>,
    } else {
    }
    %c0 = arith.constant 0 : index
    %c0_2 = arith.constant 0 : index
    %5 = vector.load %arg4[%c0, %c0_2] : memref<8x4xf32, #tpu.memory_space<vmem>>, vector<8x4xf32>
    %c0_3 = arith.constant 0 : index
    %c0_4 = arith.constant 0 : index
    %c0_5 = arith.constant 0 : index
    %6 = vector.load %arg3[%c0_3, %c0_4, %c0_5] : memref<1x4x256xf32, #tpu.memory_space<vmem>>, vector<1x4x256xf32>
    %7 = vector.shape_cast %6 : vector<1x4x256xf32> to vector<4x256xf32>
    %cst = arith.constant dense<0.000000e+00> : vector<8x256xf32>
    %8 = tpu.matmul %5, %7, %cst {dimension_numbers = #tpu.dot_dimension_numbers<[1], [0], [0], [1], [0, 0, 1, 1], [], []>, precision = #tpu.contract_precision<fp32>} : vector<8x4xf32>, vector<4x256xf32>, vector<8x256xf32> -> vector<8x256xf32>
    %c0_6 = arith.constant 0 : index
    %c0_7 = arith.constant 0 : index
    %9 = vector.load %arg5[%c0_6, %c0_7] : memref<8x1xf32, #tpu.memory_space<vmem>>, vector<8x1xf32>
    %10 = vector.broadcast %9 : vector<8x1xf32> to vector<8x256xf32>
    %11 = arith.addf %8, %10 : vector<8x256xf32>
    %c0_i32_8 = arith.constant 0 : i32
    %12 = arith.cmpi eq, %arg1, %c0_i32_8 : i32
    %13 = arith.extui %12 : i1 to i32
    %c0_i32_9 = arith.constant 0 : i32
    %14 = arith.cmpi ne, %13, %c0_i32_9 : i32
    scf.if %14 {
      %c0_14 = arith.constant 0 : index
      %c0_15 = arith.constant 0 : index
      %23 = vector.load %arg7[%c0_14, %c0_15] : memref<8x1xf32, #tpu.memory_space<vmem>>, vector<8x1xf32>
      %cst_16 = arith.constant dense<0.000000e+00> : vector<8xf32>
      %24 = vector.multi_reduction <add>, %11, %cst_16 [1] : vector<8x256xf32> to vector<8xf32>
      %25 = vector.shape_cast %24 : vector<8xf32> to vector<8x1xf32>
      %26 = arith.addf %23, %25 : vector<8x1xf32>
      %c0_17 = arith.constant 0 : index
      %c0_18 = arith.constant 0 : index
      %27 = vector.load %arg7[%c0_17, %c0_18] : memref<8x1xf32, #tpu.memory_space<vmem>>, vector<8x1xf32>
      tpu.vector_store %arg7[%c0_17, %c0_18], %26 {strides = array<i32>} : memref<8x1xf32, #tpu.memory_space<vmem>>, vector<8x1xf32>,
      %c0_19 = arith.constant 0 : index
      %c0_20 = arith.constant 0 : index
      %28 = vector.load %arg8[%c0_19, %c0_20] : memref<8x1xf32, #tpu.memory_space<vmem>>, vector<8x1xf32>
      %29 = arith.mulf %11, %11 : vector<8x256xf32>
      %cst_21 = arith.constant dense<0.000000e+00> : vector<8xf32>
      %30 = vector.multi_reduction <add>, %29, %cst_21 [1] : vector<8x256xf32> to vector<8xf32>
      %31 = vector.shape_cast %30 : vector<8xf32> to vector<8x1xf32>
      %32 = arith.addf %28, %31 : vector<8x1xf32>
      %c0_22 = arith.constant 0 : index
      %c0_23 = arith.constant 0 : index
      %33 = vector.load %arg8[%c0_22, %c0_23] : memref<8x1xf32, #tpu.memory_space<vmem>>, vector<8x1xf32>
      tpu.vector_store %arg8[%c0_22, %c0_23], %32 {strides = array<i32>} : memref<8x1xf32, #tpu.memory_space<vmem>>, vector<8x1xf32>,
    } else {
    }
    %c0_i32_10 = arith.constant 0 : i32
    %15 = arith.cmpi eq, %arg1, %c0_i32_10 : i32
    %c0_i32_11 = arith.constant 0 : i32
    %16 = arith.cmpi eq, %arg2, %c0_i32_11 : i32
    %17 = arith.andi %15, %16 : i1
    %18 = arith.extui %17 : i1 to i32
    %c0_i32_12 = arith.constant 0 : i32
    %19 = arith.cmpi ne, %18, %c0_i32_12 : i32
    scf.if %19 {
      %c0_14 = arith.constant 0 : index
      %c0_15 = arith.constant 0 : index
      %23 = vector.load %arg5[%c0_14, %c0_15] : memref<8x1xf32, #tpu.memory_space<vmem>>, vector<8x1xf32>
      %c0_16 = arith.constant 0 : index
      %c0_17 = arith.constant 0 : index
      %24 = vector.load %arg7[%c0_16, %c0_17] : memref<8x1xf32, #tpu.memory_space<vmem>>, vector<8x1xf32>
      %cst_18 = arith.constant 0.000000e+00 : f32
      %25 = vector.broadcast %cst_18 : f32 to vector<8x1xf32>
      %26 = arith.mulf %25, %23 : vector<8x1xf32>
      %27 = arith.subf %24, %26 : vector<8x1xf32>
      %c0_19 = arith.constant 0 : index
      %c0_20 = arith.constant 0 : index
      %28 = vector.load %arg8[%c0_19, %c0_20] : memref<8x1xf32, #tpu.memory_space<vmem>>, vector<8x1xf32>
      %29 = arith.mulf %23, %23 : vector<8x1xf32>
      %cst_21 = arith.constant 0.000000e+00 : f32
      %30 = vector.broadcast %cst_21 : f32 to vector<8x1xf32>
      %31 = arith.mulf %30, %29 : vector<8x1xf32>
      %32 = arith.subf %28, %31 : vector<8x1xf32>
      %cst_22 = arith.constant 3.906250e-03 : f32
      %33 = vector.broadcast %cst_22 : f32 to vector<8x1xf32>
      %34 = arith.mulf %27, %33 : vector<8x1xf32>
      %cst_23 = arith.constant 3.906250e-03 : f32
      %35 = vector.broadcast %cst_23 : f32 to vector<8x1xf32>
      %36 = arith.mulf %32, %35 : vector<8x1xf32>
      %37 = arith.mulf %34, %34 : vector<8x1xf32>
      %38 = arith.subf %36, %37 : vector<8x1xf32>
      %cst_24 = arith.constant 0.000000e+00 : f32
      %39 = vector.broadcast %cst_24 : f32 to vector<8x1xf32>
      %40 = arith.maximumf %38, %39 : vector<8x1xf32>
      %c0_25 = arith.constant 0 : index
      %c0_26 = arith.constant 0 : index
      %41 = vector.load %arg7[%c0_25, %c0_26] : memref<8x1xf32, #tpu.memory_space<vmem>>, vector<8x1xf32>
      tpu.vector_store %arg7[%c0_25, %c0_26], %34 {strides = array<i32>} : memref<8x1xf32, #tpu.memory_space<vmem>>, vector<8x1xf32>,
      %cst_27 = arith.constant 9.99999974E-6 : f32
      %42 = vector.broadcast %cst_27 : f32 to vector<8x1xf32>
      %43 = arith.addf %40, %42 : vector<8x1xf32>
      %44 = math.rsqrt %43 : vector<8x1xf32>
      %c0_28 = arith.constant 0 : index
      %c0_29 = arith.constant 0 : index
      %45 = vector.load %arg8[%c0_28, %c0_29] : memref<8x1xf32, #tpu.memory_space<vmem>>, vector<8x1xf32>
      tpu.vector_store %arg8[%c0_28, %c0_29], %44 {strides = array<i32>} : memref<8x1xf32, #tpu.memory_space<vmem>>, vector<8x1xf32>,
    } else {
    }
    %c1_i32 = arith.constant 1 : i32
    %20 = arith.cmpi eq, %arg1, %c1_i32 : i32
    %21 = arith.extui %20 : i1 to i32
    %c0_i32_13 = arith.constant 0 : i32
    %22 = arith.cmpi ne, %21, %c0_i32_13 : i32
    scf.if %22 {
      %c0_14 = arith.constant 0 : index
      %c0_15 = arith.constant 0 : index
      %23 = vector.load %arg7[%c0_14, %c0_15] : memref<8x1xf32, #tpu.memory_space<vmem>>, vector<8x1xf32>
      %24 = vector.broadcast %23 : vector<8x1xf32> to vector<8x256xf32>
      %25 = arith.subf %11, %24 : vector<8x256xf32>
      %c0_16 = arith.constant 0 : index
      %c0_17 = arith.constant 0 : index
      %26 = vector.load %arg8[%c0_16, %c0_17] : memref<8x1xf32, #tpu.memory_space<vmem>>, vector<8x1xf32>
      %27 = vector.broadcast %26 : vector<8x1xf32> to vector<8x256xf32>
      %28 = arith.mulf %25, %27 : vector<8x256xf32>
      %c0_18 = arith.constant 0 : index
      %c0_19 = arith.constant 0 : index
      %c0_20 = arith.constant 0 : index
      %29 = vector.load %arg6[%c0_18, %c0_19, %c0_20] : memref<1x8x256xf32, #tpu.memory_space<vmem>>, vector<1x8x256xf32>
      %30 = vector.shape_cast %29 : vector<1x8x256xf32> to vector<8x256xf32>
      %31 = vector.shape_cast %28 : vector<8x256xf32> to vector<1x8x256xf32>
      tpu.vector_store %arg6[%c0_18, %c0_19, %c0_20], %31 {strides = array<i32>} : memref<1x8x256xf32, #tpu.memory_space<vmem>>, vector<1x8x256xf32>,
    } else {
    }
    return
  }
  func.func @transform_0(%arg0: i32, %arg1: i32, %arg2: i32) -> (i32, i32, i32) {
    %c0_i32 = arith.constant 0 : i32
    %c0_i32_0 = arith.constant 0 : i32
    return %arg0, %c0_i32, %arg2 : i32, i32, i32
  }
  func.func @transform_1(%arg0: i32, %arg1: i32, %arg2: i32) -> (i32, i32) {
    %c0_i32 = arith.constant 0 : i32
    %c0_i32_0 = arith.constant 0 : i32
    %c0_i32_1 = arith.constant 0 : i32
    return %c0_i32, %c0_i32_0 : i32, i32
  }
  func.func @transform_2(%arg0: i32, %arg1: i32, %arg2: i32) -> (i32, i32) {
    %c0_i32 = arith.constant 0 : i32
    %c0_i32_0 = arith.constant 0 : i32
    %c0_i32_1 = arith.constant 0 : i32
    return %c0_i32, %c0_i32_0 : i32, i32
  }
  func.func @transform_3(%arg0: i32, %arg1: i32, %arg2: i32) -> (i32, i32, i32) {
    %0 = arith.muli %arg2, %arg1 : i32
    %c0_i32 = arith.constant 0 : i32
    %c0_i32_0 = arith.constant 0 : i32
    return %arg0, %c0_i32, %0 : i32, i32, i32
  }
}

</mosaic_0001>

<bundles_post_ra>
// kernel: tpu_custom_call.1
= control target key start
LH: loop header
LB: loop body
LE: loop exit
PB: predicated region body
PF: predicated region fallthrough
CT: control target
= control target key end

     0   :  { %8 = vsyncpa [#allocation5], 0  ;;  %s1246_s0 = inlined_call_operand.vmem [shape: f32[2,4,256], index: 0, kind: input, shape index: {}]   ;;  %s1247_s1 = inlined_call_operand.vmem [shape: f32[8,4], index: 1, kind: input, shape index: {}]   ;;  %s1248_s2 = inlined_call_operand.vmem [shape: f32[8,1], index: 2, kind: input, shape index: {}]   ;;  %s1249_s3 = inlined_call_operand.hbm [shape: f32[2,8,256], index: 3, kind: output, shape index: {}]  }
   0x1   :  { %10 = vsyncpa [#allocation5 + $0x1], 0  ;;  %s1095_s12 = smov 0   ;;  %s1097_s13 = smov 0  }
   0x2   :  { %s1099_s14 = smov 0   ;;  %s1101_s15 = smov 0  }
   0x3   :  { %s1103_s16 = smov 0   ;;  %s1105_s17 = smov 0  }
   0x4   :  { %s1107_s18 = smov 0   ;;  %s1109_s19 = smov 0  }
   0x5 LB: > { %s863_s20 = sadd.s32 4294967295, %s1068_s19   ;;  %s864_s21 = sadd.s32 4294967294, %s1068_s19   ;;  %s1068_s19 = sphi %s1109_s19, %s16_s19   ;;  %s1064_s18 = sphi %s1107_s18, %s1258_s18   ;;  %s1060_s17 = sphi %s1105_s17, %s1257_s17   ;;  %s1056_s16 = sphi %s1103_s16, %s1256_s16   ;;  %s1052_s15 = sphi %s1101_s15, %s1255_s15   ;;  %s1048_s14 = sphi %s1099_s14, %s1254_s14   ;;  %s1044_s13 = sphi %s1097_s13, %s1253_s13   ;;  %s1040_s12 = sphi %s1095_s12, %s1252_s12  }
   0x6   : > { %s31_s22 = sadd.s32 1, %s1060_s17  ;;  %s35_s23 = sadd.s32 1, %s1064_s18 }
   0x7   : > { %p33_p0 = scmp.ge.s32.totalorder %s31_s22, 2  ;;  %p126_p1 = scmp.ne.s32.totalorder %s1048_s14, %s1044_s13 }
   0x8   : > { %p127_p2 = scmp.eq.s32.totalorder %s863_s20, 3  ;;  %p132_p4 = scmp.ne.s32.totalorder %s1044_s13, %s1040_s12 }
   0x9   : > { %s1260_s22 = smov (%p33_p0, %s31_s22), 0  ;;  %s1262_s23 = smov (!%p33_p0, %s35_s23), %s1064_s18 }
   0xa   : > { %p1144_p3 = por %p127_p2, %p126_p1  ;;  %p37_p5 = scmp.ge.s32.totalorder %s1262_s23, 2 }
   0xb   : > { %p133_p6 = scmp.eq.s32.totalorder %s864_s21, 3  ;;  %p867_p7 = scmp.ge.s32.totalorder %s1068_s19, 1 }
   0xc   : > { %p170_p8 = scmp.lt.s32.totalorder %s1068_s19, 5  ;;  %s1264_s23 = smov (%p37_p5, %s1262_s23), 0 }
   0xd   : > { %p1154_p9 = por %p133_p6, %p132_p4  ;;  %s111_s26 = ssub.s32 %s1064_s18, %s1264_s23 }
   0xe   : > { %p171_p10 = pnand %p867_p7, %p170_p8  ;;  %s116_s27 = sadd.s32 1, %s1048_s14 }
   0xf   : > { %p114_p11 = scmp.eq.s32.totalorder %s111_s26, 0  ;;  %s195_s29 = sand.u32 (!%p171_p10), 1, %s1044_s13  }
  0x10   : > { %174 = sbr.rel (%p171_p10) target bundleno = 624 (0x270), region = 32  ;;  %p199_p12 = scmp.lt.s32.totalorder (!%p171_p10), %s1056_s16, 1 }
  0x11   : > { %s1162_s28 = scalar_select %p114_p11, %s1048_s14, %s116_s27  }
  0x12   : > { %s868_s30 = sshll.u32 (!%p171_p10), %s195_s29, 4  ;;  %p210_p13 = scmp.eq.s32.totalorder (!%p171_p10), %s1052_s15, 0 }
  0x13   : > { %s1173_s9 = scalar_lea.vmem (!%p171_p10), [#allocation4], %s868_s30 }
  0x17   : > { %s200_s4 = scalar_select %p199_p12, %s1056_s16, 1 }
  0x18   : > { %215 = sbr.rel (!%p210_p13) target bundleno = 31 (0x1f), region = 36  ;;  %vm216_vm0 = vcmask (%p210_p13), 7168   ;;  %v1070_v0 = vmov (%p210_p13), 0.0  }
  0x19   : > { %s879_s5 = sshll.u32 %s200_s4, 3  ;;  %217 = vst.msk [vmem:[#allocation2] sm:$0xff] (%p210_p13), %vm216_vm0, %v1070_v0  ;;  %218 = vst.msk [vmem:[#allocation3] sm:$0xff] (%p210_p13), %vm216_vm0, %v1070_v0 }
  0x1a   : > { %s206_s8 = scalar_lea.vmem %s1246_s0, %s879_s5 }
  0x1f PF: > { %v220_v1 = vld [vmem:[%s206_s8] sm:$0xff]  ;;  %vm233_vm1 = vcmask 1043456   ;;  %vm229_vm2 = vcmask 31744   ;;  %v1071_v5 = vmov 0.0   ;;  %v1072_v10 = vmov 0   ;;  %p872_p0 = scmp.ne.s32.totalorder %s1052_s15, 0 }
  0x20   : > { %v219_v2 = vld [vmem:[%s1247_s1] sm:$0xff]  ;;  %v228_v3 = vcombine.high %v220_v1, %v220_v1  ;;  %v234_v4 = vsel %vm233_vm1, %v220_v1, 0  ;;  %541 = vmatprep.mubr.f32.mxu0 %v1071_v5  ;;  %304 = vmatprep.mubr.f32.mxu1 %v1071_v5  ;;  %vm711_vm3 = vcmask (!%p872_p0), 7168   ;;  %v713_v41 = vld [vmem:[#allocation3] sm:$0xff] (!%p872_p0) }
  0x21   : > { %v231_v6 = vsel %vm229_vm2, %v219_v2, 0  ;;  %v221_v7 = vld [vmem:[%s1248_s2] sm:$0xff]  ;;  %v240_v8 = vand.u32 4294901760, %v234_v4  ;;  %969 = vset.pattern.permute.xlu0 %v1072_v10 }
  0x22   : > { %v305_v9 = vand.u32 4294901760, %v231_v6  ;;  %v236_v11 = vsel %vm233_vm1, %v228_v3, 0  ;;  %224 = vperm.xlu0 %969, %v221_v7   ;;  %v706_v38 = vld [vmem:[#allocation2] sm:$0xff] (!%p872_p0) }
  0x23   : > { %v238_v12 = vand.u32 4294901760, %v236_v11  ;;  %v323_v13 = vsub.f32 %v234_v4, %v240_v8 }
  0x24   : > { %v306_v14 = vsub.f32 %v231_v6, %v305_v9 }
  0x25   : > { %476 = vmatprep.subr.mxu0 %v238_v12  ;;  %239 = vmatprep.subr.mxu1 %v238_v12  ;;  %v317_v16 = vsub.f32 %v236_v11, %v238_v12  ;;  %v324_v17 = vand.u32 4294901760, %v323_v13 }
  0x26   : > { %v307_v15 = vand.u32 4294901760, %v306_v14  ;;  %478 = vmatpush1.msra.mxu0 %v240_v8  ;;  %241 = vmatpush1.msra.mxu1 %v240_v8 }
  0x27   : > { %v318_v19 = vand.u32 4294901760, %v317_v16  ;;  %v325_v20 = vsub.f32 %v323_v13, %v324_v17 }
  0x28   : > { %545 = vmatmul.mubr.f32.vlgmr.msra.gmra.mrb[0].mxu0 %v307_v15  ;;  %v308_v18 = vsub.f32 %v306_v14, %v307_v15 }
  0x29   : > { %621 = vmatprep.mubr.f32.mxu0 %v1071_v5  ;;  %v319_v22 = vsub.f32 %v317_v16, %v318_v19  ;;  %554 = vmatprep.subr.mxu0 %v318_v19  ;;  %v326_v23 = vand.u32 4294901760, %v325_v20 }
  0x2a   : > { %v309_v21 = vand.u32 4294901760, %v308_v18  ;;  %558 = vmatpush1.msra.mxu0 %v324_v17 }
  0x2b   : > { %v320_v24 = vand.u32 4294901760, %v319_v22  ;;  %630 = vmatprep.subr.mxu0 %v238_v12 }
  0x2c   : > { %310 = vmatmul.mubr.f32.vlgmr.msra.gmra.mrb[0].mxu1 %v309_v21 }
  0x2d   : > { %390 = vmatprep.mubr.f32.mxu1 %v1071_v5  ;;  %321 = vmatprep.subr.mxu1 %v320_v24 }
  0x2e   : > { %327 = vmatpush1.msra.mxu1 %v326_v23 }
  0x2f   : > { %400 = vmatprep.subr.mxu1 %v317_v16 }
  0x30   : > { %623 = vmatmul.mubr.f32.vlgmr.msra.gmra.mrb[0].mxu0 %v305_v9 }
  0x31   : > { %632 = vmatpush1.msra.mxu0 %v240_v8  ;;  %695 = vmatprep.mubr.f32.mxu0 %v1071_v5 }
  0x34   : > { %392 = vmatmul.mubr.f32.vlgmr.msra.gmra.mrb[0].mxu1 %v305_v9 }
  0x35   : > { %403 = vmatpush1.msra.mxu1 %v323_v13  ;;  %466 = vmatprep.mubr.f32.mxu1 %v1071_v5 }
  0x38   : > { %697 = vmatmul.mubr.f32.vlgmr.msra.gmra.mrb[0].mxu0 %v305_v9 }
  0x3c   : > { %469 = vmatmul.mubr.f32.vlgmr.msra.gmra.mrb[0].mxu1 %v306_v14 }
  0xa1   : > { %v225_v27 = vpop.permute.xlu0 %224 }
 0x10b   : > { %v698_v25 = vpop.f32.mrb[0].mxu0 }
 0x10c   : > { %v700_v26 = vpop.f32.mrb[1].mxu0 }
 0x10d   : > { %705 = sbr.rel (%p872_p0) target bundleno = 428 (0x1ac), region = 40 }
 0x10f   : > { %v470_v28 = vpop.f32.mrb[0].mxu1 }
 0x110   : > { %v882_v29 = vadd.f32 %v470_v28, %v225_v27  ;;  %v472_v30 = vpop.f32.mrb[1].mxu1 }
 0x111   : > { %v884_v31 = vadd.f32 %v472_v30, %v225_v27 }
 0x112   : > { %v883_v32 = vadd.f32 %v882_v29, %v698_v25 }
 0x113   : > { %v885_v33 = vadd.f32 %v884_v31, %v700_v26 }
 0x114   : > { %v714_v35 = vmul.f32 %v883_v32, %v883_v32 }
 0x115   : > { %v707_v34 = vadd.f32 %v885_v33, %v883_v32  ;;  %v715_v36 = vmul.f32 %v885_v33, %v885_v33 }
 0x117   : > { %708 = vadd.xlane.f32.xlu0 %v707_v34  ;;  %v716_v37 = vadd.f32 %v715_v36, %v714_v35 }
 0x11b   : > { %717 = vadd.xlane.f32.xlu0 %v716_v37 }
 0x1a4   : > { %v709_v39 = vpop.xlane.xlu0 %708 }
 0x1a5   : > { %v710_v40 = vadd.f32 %v709_v39, %v706_v38 }
 0x1a7   : > { %712 = vst.msk [vmem:[#allocation2] sm:$0xff] %vm711_vm3, %v710_v40 }
 0x1a8   : > { %v718_v42 = vpop.xlane.xlu0 %717 }
 0x1a9   : > { %v719_v43 = vadd.f32 %v718_v42, %v713_v41 }
 0x1ab   : > { %720 = vst.msk [vmem:[#allocation3] sm:$0xff] %vm711_vm3, %v719_v43 }
 0x1ac PF: > { %722 = sbr.rel (!%p210_p13) target bundleno = 457 (0x1c9), region = 44  ;;  %v723_v44 = vld [vmem:[%s1248_s2] sm:$0xff] (%p210_p13)  ;;  %vm736_vm4 = vcmask (%p210_p13), 7168  }
 0x1ad   : > { %v725_v46 = vmul.f32 (%p210_p13), 0.0, %v723_v44  ;;  %v728_v47 = vmul.f32 (%p210_p13), %v723_v44, %v723_v44 }
 0x1ae   : > { %v724_v45 = vld [vmem:[#allocation2] sm:$0xff] (%p210_p13) }
 0x1af   : > { %v726_v49 = vsub.f32 (%p210_p13), %v724_v45, %v725_v46  ;;  %v729_v50 = vmul.f32 (%p210_p13), 0.0, %v728_v47 }
 0x1b1   : > { %v731_v51 = vmul.f32 (%p210_p13), 0.00390625, %v726_v49 }
 0x1b2   : > { %v727_v48 = vld [vmem:[#allocation3] sm:$0xff] (%p210_p13) }
 0x1b3   : > { %v730_v52 = vsub.f32 %v727_v48, %v729_v50  ;;  %v733_v53 = vmul.f32 %v731_v51, %v731_v51  ;;  %737 = vst.msk [vmem:[#allocation2] sm:$0xff] %vm736_vm4, %v731_v51 }
 0x1b5   : > { %v732_v54 = vmul.f32 0.00390625, %v730_v52 }
 0x1b7   : > { %v734_v55 = vsub.f32 %v732_v54, %v733_v53 }
 0x1b9   : > { %v735_v56 = vmax.f32 %v734_v55, 0.0 }
 0x1bb   : > { %v738_v57 = vadd.f32 1e-05, %v735_v56 }
 0x1bd   : > { %971 = vrsqrt.f32 %v738_v57 }
 0x1c7   : > { %v972_v58 = vpop.eup %971 }
 0x1c8   : > { %740 = vst.msk [vmem:[#allocation3] sm:$0xff] %vm736_vm4, %v972_v58 }
 0x1c9 PF: > { %p873_p1 = scmp.ne.s32.totalorder %s1052_s15, 1 }
 0x1ca   : > { %v1073_v60 = vmov (!%p873_p1), 0  }
 0x1cb   : > { %744 = sbr.rel (%p873_p1) target bundleno = 600 (0x258), region = 48  ;;  %973 = vset.pattern.permute.xlu0 (!%p873_p1), %v1073_v60 }
 0x1cf   : > { %v753_v61 = vld [vmem:[#allocation3] sm:$0xff] (!%p873_p1) }
 0x1d0   : > { %v745_v59 = vld [vmem:[#allocation2] sm:$0xff] (!%p873_p1) }
 0x1d1   : > { %748 = vperm.xlu0 (!%p873_p1), %973, %v745_v59  }
 0x1d5   : > { %756 = vperm.xlu0 %973, %v753_v61  }
 0x250   : > { %v749_v62 = vpop.permute.xlu0 %748 }
 0x251   : > { %v751_v63 = vsub.f32 %v883_v32, %v749_v62  ;;  %v752_v0 = vsub.f32 %v885_v33, %v749_v62 }
 0x254   : > { %v757_v1 = vpop.permute.xlu0 %756 }
 0x255   : > { %v759_v2 = vmul.f32 %v757_v1, %v751_v63  ;;  %v760_v3 = vmul.f32 %v757_v1, %v752_v0 }
 0x257   : > { %761 = vst [vmem:[%s1173_s9] sm:$0xff] %v759_v2  ;;  %762 = vst [vmem:[%s1173_s9 + $0x8] sm:$0xff] %v760_v3 }
 0x258 PF: > { %s881_s15 = sshll.u32 %s1056_s16, 8  ;;  %s781_s6 = sshll.u32 %s1173_s9, 4  ;;  %s782_s6 = int_to_ptr.vmem [resolvable:$true] %s781_s6 }
 0x259   : > { %s1196_s5 = scalar_lea.hbm %s1249_s3, %s881_s15  ;;  %s764_s7 = scalar_lea.sflag [#allocation5], %s195_s29 }
 0x25a   : > { %s974_s8 = scalar_lea.vmem %s782_s6, 256  ;;  %s1074_s10 = smov [#allocation4]  }
 0x25b   : > { %p975_p2 = scmp.ne.s32.totalorder %s782_s6, %s974_s8  ;;  %s978_s11 = sshll.u32 %s1074_s10, 4  ;;  %s979_s11 = int_to_ptr.vmem [resolvable:$false] %s978_s11 }
 0x25c   : > { %s980_s20 = scalar_lea.vmem %s979_s11, 512  ;;  %p981_p6 = scmp.lt.s32.totalorder %s782_s6, %s979_s11 }
 0x25d   : > { %p976_p4 = pnand %p975_p2, %p1144_p3  ;;  %p982_p7 = scmp.lt.s32.totalorder %s980_s20, %s974_s8 }
 0x25f   : > { %p977_p5 = pneg %p976_p4  ;;  %p983_p8 = por %p982_p7, %p981_p6 }
 0x261   : > { %p984_p10 = pnand %p983_p8, %p977_p5 }
 0x263   : > { %987 = shalt.err (!%p984_p10)
}
 0x264   : > { %s988_s16 = scalar_lea.hbm %s1196_s5, 256  ;;  %s992_s21 = scalar_lea.hbm %s1249_s3, 512 }
 0x265   : > { %p989_p11 = scmp.ne.s32.totalorder %s1196_s5, %s988_s16  ;;  %p993_p0 = scmp.lt.u32.totalorder %s1196_s5, %s1249_s3 }
 0x266   : > { %p994_p1 = scmp.lt.u32.totalorder %s992_s21, %s988_s16  ;;  %p996_p4 = scmp.lt.u32.totalorder %s988_s16, %s1196_s5 }
 0x267   : > { %p990_p12 = pnand %p989_p11, %p1144_p3 }
 0x268   : > { %p995_p2 = por %p994_p1, %p993_p0 }
 0x269   : > { %p991_p13 = pneg %p990_p12 }
 0x26a   : > { %p997_p5 = por %p996_p4, %p995_p2 }
 0x26c   : > { %p998_p6 = pnand %p997_p5, %p991_p13 }
 0x26e   : > { %1001 = shalt.err (!%p998_p6)
}
 0x26f   : > { %894 = dma.vmem_to_hbm [thread:$0]  (%p1144_p3), %s782_s6, 256, %s1196_s5, %s764_s7  }
 0x270 PF: > { %p900_p7 = scmp.ge.s32.totalorder %s1068_s19, 2  ;;  %s793_s15 = sand.u32 1, %s1040_s12  }
 0x271   : > { %s794_s30 = scalar_lea.sflag [#allocation5], %s793_s15 }
 0x272   : > { %p897_p8 = pnand %p900_p7, %p1154_p9 }
 0x274   : > { %1035 = dma.done.wait (!%p897_p8), %s794_s30, 256  }
 0x275   : > { %1037 = vsyncadd (!%p897_p8), %s794_s30, 4294967040  ;;  %s16_s19 = sadd.s32 1, %s1068_s19   ;;  %s1252_s12 = smov %s1044_s13 }
 0x276   : > { %p13_p10 = scmp.ge.s32.totalorder %s16_s19, 6   ;;  %s1253_s13 = smov %s1048_s14 }
 0x277   : > { %s1254_s14 = smov %s1162_s28  ;;  %s1255_s15 = smov %s1060_s17 }
 0x278   : > { %s1256_s16 = smov %s1064_s18  ;;  %s1257_s17 = smov %s1260_s22 }
 0x279   : > { %s1258_s18 = smov %s1264_s23  ;;  %15 = sbr.rel (!%p13_p10) target bundleno = 5 (0x5), region = 83 }
 0x280   :  { %799 = vsyncpa [#allocation5], 1 }
 0x281   :  { %801 = vsyncpa [#allocation5 + $0x1], 1 }

</bundles_post_ra>
